<compile_context>
chip_gen: v7x
topology: tpu7x:2x2x1
jax: 0.10.0
libtpu: 0.0.40
codegen_flags: <defaults>
</compile_context>

<pallas_src>
import jax
import jax.numpy as jnp
from jax import lax
from jax.experimental import pallas as pl
from jax.experimental.pallas import tpu as pltpu

_LANE = 128


def _make_fused_kernel(max_rank):
    """Kernel computing, for every rank r:
         out_r = sigmoid( H_r @ (X_r W_same_r)
                          + B_{r+1} @ (X_{r+1} W_h2l_r)      [if r < max_rank]
                          + B_r^T   @ (X_{r-1} W_l2h_r) )    [if r > 0]
    """
    R = max_rank
    n_feat = R + 1
    n_adj = R + 1
    n_inc = R
    # Weight-stack layout: same[0..R], h2l[0..R-1], l2h[1..R]
    w_same = {r: r for r in range(R + 1)}
    w_h2l = {r: (R + 1) + r for r in range(R)}
    w_l2h = {r: (R + 1) + R + (r - 1) for r in range(1, R + 1)}

    def kernel(w_ref, *refs):
        feat = refs[0:n_feat]                                   # X_r: [n_r, C]
        adj = refs[n_feat:n_feat + n_adj]                       # H_r: [n_r, n_r]
        inc = refs[n_feat + n_adj:n_feat + n_adj + n_inc]       # inc[j] = B_{j+1}: [n_j, n_{j+1}]
        outs = refs[n_feat + n_adj + n_inc:]                    # out_r: [n_r, C_pad]

        def xw(src_rank, widx):
            # [n_src, C] @ [C, C_pad] -> [n_src, C_pad], f32 accumulation on the MXU.
            return jnp.dot(feat[src_rank][...], w_ref[widx],
                           preferred_element_type=jnp.float32)

        for rank in range(R + 1):
            # same-rank message: H_r @ (X_r W)
            acc = jnp.dot(adj[rank][...], xw(rank, w_same[rank]),
                          preferred_element_type=jnp.float32)
            if rank < R:
                # high-to-low message: B_{r+1} @ (X_{r+1} W)
                acc = acc + jnp.dot(inc[rank][...], xw(rank + 1, w_h2l[rank]),
                                    preferred_element_type=jnp.float32)
            if rank > 0:
                # low-to-high message: B_r^T @ (X_{r-1} W) as a transposed
                # contraction (contract dim 0 of B_r with dim 0 of XW) — free on
                # the MXU, no materialized transpose.
                acc = acc + lax.dot_general(
                    inc[rank - 1][...], xw(rank - 1, w_l2h[rank]),
                    dimension_numbers=(((0,), (0,)), ((), ())),
                    preferred_element_type=jnp.float32)
            # Aggregation(aggr_func='sum', update_func='sigmoid')
            outs[rank][...] = jax.nn.sigmoid(acc).astype(outs[rank].dtype)

    return kernel


def sccn_layer_forward(features, incidences, adjacencies, weights, max_rank):
    """SCCN layer forward.

    features:    dict rank -> [n_r, C]
    incidences:  dict rank (1..max_rank) -> B_r, [n_{r-1}, n_r]   (dense)
    adjacencies: dict rank (0..max_rank) -> H_r, [n_r, n_r]       (dense)
    weights:     dict with 'same' (0..max), 'h2l' (0..max-1), 'l2h' (1..max), each [C, C]
    """
    R = max_rank
    channels = features[0].shape[1]
    dtype = features[0].dtype
    c_pad = ((channels + _LANE - 1) // _LANE) * _LANE

    # Stack every [C, C] weight into one [NW, C, c_pad] slab (single DMA), padding the
    # output-channel dim so every in-kernel matmul result and output store is lane-dense.
    w_list = ([weights["same"][r] for r in range(R + 1)]
              + [weights["h2l"][r] for r in range(R)]
              + [weights["l2h"][r] for r in range(1, R + 1)])
    w_stack = jnp.stack(
        [jnp.pad(w, ((0, 0), (0, c_pad - channels))) for w in w_list]
    ).astype(dtype)

    feats = [features[r] for r in range(R + 1)]
    adjs = [adjacencies[r] for r in range(R + 1)]
    incs = [incidences[r] for r in range(1, R + 1)]
    flat_args = [w_stack] + feats + adjs + incs

    vmem = pl.BlockSpec(memory_space=pltpu.MemorySpace.VMEM)
    out_shapes = tuple(
        jax.ShapeDtypeStruct((features[r].shape[0], c_pad), dtype)
        for r in range(R + 1)
    )

    outs = pl.pallas_call(
        _make_fused_kernel(R),
        out_shape=out_shapes,
        in_specs=[vmem] * len(flat_args),
        out_specs=tuple([vmem] * (R + 1)),
    )(*flat_args)

    # Strip the lane padding back to the logical channel count.
    return {r: outs[r][:, :channels] for r in range(R + 1)}


def _reference_forward(features, incidences, adjacencies, weights, max_rank):
    """Plain-JAX reference matching the PyTorch SCCNLayer semantics."""
    out = {}
    for rank in range(max_rank + 1):
        terms = [adjacencies[rank] @ (features[rank] @ weights["same"][rank])]
        if rank < max_rank:
            terms.append(incidences[rank + 1] @ (features[rank + 1] @ weights["h2l"][rank]))
        if rank > 0:
            terms.append(incidences[rank].T @ (features[rank - 1] @ weights["l2h"][rank]))
        out[rank] = jax.nn.sigmoid(sum(terms))
    return out


if __name__ == "__main__":
    key = jax.random.PRNGKey(0)
    channels = 32
    max_rank = 2
    n_cells = {0: 16, 1: 24, 2: 8}
    dtype = jnp.float32

    keys = iter(jax.random.split(key, 32))

    # Cell features per rank: [n_r, channels]
    features = {
        r: jax.random.normal(next(keys), (n_cells[r], channels), dtype=dtype)
        for r in range(max_rank + 1)
    }
    # Incidence B_r: [n_{r-1}, n_r]  (dense, stands in for torch.sparse)
    incidences = {
        r: jax.random.normal(next(keys), (n_cells[r - 1], n_cells[r]), dtype=dtype) * 0.1
        for r in range(1, max_rank + 1)
    }
    # Adjacency H_r: [n_r, n_r]
    adjacencies = {
        r: jax.random.normal(next(keys), (n_cells[r], n_cells[r]), dtype=dtype) * 0.1
        for r in range(max_rank + 1)
    }

    # Deterministic Conv weights (Theta), shape [channels, channels] each.
    def xavier_like(k):
        scale = (6.0 / (channels + channels)) ** 0.5
        return jax.random.uniform(k, (channels, channels), dtype=dtype,
                                  minval=-scale, maxval=scale)

    weights = {
        "same": {r: xavier_like(next(keys)) for r in range(max_rank + 1)},
        "h2l": {r: xavier_like(next(keys)) for r in range(max_rank)},
        "l2h": {r: xavier_like(next(keys)) for r in range(1, max_rank + 1)},
    }

    out = sccn_layer_forward(features, incidences, adjacencies, weights, max_rank)
    out = {r: jax.block_until_ready(v) for r, v in out.items()}

    ref = _reference_forward(features, incidences, adjacencies, weights, max_rank)
    for r in range(max_rank + 1):
        assert out[r].shape == (n_cells[r], channels)
        assert jnp.allclose(out[r], ref[r], atol=1e-5, rtol=1e-5), f"mismatch at rank {r}"

    print("KERNEL_OK")
</pallas_src>

<mosaic_0001>
module attributes {stable_mosaic.version = 11 : i64} {
  func.func @kernel(%arg0: memref<7x32x128xf32, #tpu.memory_space<vmem>>, %arg1: memref<16x32xf32, #tpu.memory_space<vmem>>, %arg2: memref<24x32xf32, #tpu.memory_space<vmem>>, %arg3: memref<8x32xf32, #tpu.memory_space<vmem>>, %arg4: memref<16x16xf32, #tpu.memory_space<vmem>>, %arg5: memref<24x24xf32, #tpu.memory_space<vmem>>, %arg6: memref<8x8xf32, #tpu.memory_space<vmem>>, %arg7: memref<16x24xf32, #tpu.memory_space<vmem>>, %arg8: memref<24x8xf32, #tpu.memory_space<vmem>>, %arg9: memref<16x128xf32, #tpu.memory_space<vmem>>, %arg10: memref<24x128xf32, #tpu.memory_space<vmem>>, %arg11: memref<8x128xf32, #tpu.memory_space<vmem>>) attributes {dimension_semantics = [], scalar_prefetch = 0 : i64, scratch_operands = 0 : i64, tpu.core_type = #tpu.core_type<tc>} {
    %c0 = arith.constant 0 : index
    %c0_0 = arith.constant 0 : index
    %0 = vector.load %arg4[%c0, %c0_0] : memref<16x16xf32, #tpu.memory_space<vmem>>, vector<16x16xf32>
    %c0_1 = arith.constant 0 : index
    %c0_2 = arith.constant 0 : index
    %1 = vector.load %arg1[%c0_1, %c0_2] : memref<16x32xf32, #tpu.memory_space<vmem>>, vector<16x32xf32>
    %c0_3 = arith.constant 0 : index
    %c0_4 = arith.constant 0 : index
    %c0_5 = arith.constant 0 : index
    %2 = vector.load %arg0[%c0_3, %c0_4, %c0_5] : memref<7x32x128xf32, #tpu.memory_space<vmem>>, vector<1x32x128xf32>
    %3 = vector.shape_cast %2 : vector<1x32x128xf32> to vector<32x128xf32>
    %cst = arith.constant dense<0.000000e+00> : vector<16x128xf32>
    %4 = tpu.matmul %1, %3, %cst {dimension_numbers = #tpu.dot_dimension_numbers<[1], [0], [0], [1], [0, 0, 1, 1], [], []>} : vector<16x32xf32>, vector<32x128xf32>, vector<16x128xf32> -> vector<16x128xf32>
    %cst_6 = arith.constant dense<0.000000e+00> : vector<16x128xf32>
    %5 = tpu.matmul %0, %4, %cst_6 {dimension_numbers = #tpu.dot_dimension_numbers<[1], [0], [0], [1], [0, 0, 1, 1], [], []>} : vector<16x16xf32>, vector<16x128xf32>, vector<16x128xf32> -> vector<16x128xf32>
    %c0_7 = arith.constant 0 : index
    %c0_8 = arith.constant 0 : index
    %6 = vector.load %arg7[%c0_7, %c0_8] : memref<16x24xf32, #tpu.memory_space<vmem>>, vector<16x24xf32>
    %c0_9 = arith.constant 0 : index
    %c0_10 = arith.constant 0 : index
    %7 = vector.load %arg2[%c0_9, %c0_10] : memref<24x32xf32, #tpu.memory_space<vmem>>, vector<24x32xf32>
    %c3 = arith.constant 3 : index
    %c0_11 = arith.constant 0 : index
    %c0_12 = arith.constant 0 : index
    %8 = vector.load %arg0[%c3, %c0_11, %c0_12] : memref<7x32x128xf32, #tpu.memory_space<vmem>>, vector<1x32x128xf32>
    %9 = vector.shape_cast %8 : vector<1x32x128xf32> to vector<32x128xf32>
    %cst_13 = arith.constant dense<0.000000e+00> : vector<24x128xf32>
    %10 = tpu.matmul %7, %9, %cst_13 {dimension_numbers = #tpu.dot_dimension_numbers<[1], [0], [0], [1], [0, 0, 1, 1], [], []>} : vector<24x32xf32>, vector<32x128xf32>, vector<24x128xf32> -> vector<24x128xf32>
    %cst_14 = arith.constant dense<0.000000e+00> : vector<16x128xf32>
    %11 = tpu.matmul %6, %10, %cst_14 {dimension_numbers = #tpu.dot_dimension_numbers<[1], [0], [0], [1], [0, 0, 1, 1], [], []>} : vector<16x24xf32>, vector<24x128xf32>, vector<16x128xf32> -> vector<16x128xf32>
    %12 = arith.addf %5, %11 : vector<16x128xf32>
    %13 = arith.negf %12 : vector<16x128xf32>
    %14 = math.exp %13 : vector<16x128xf32>
    %cst_15 = arith.constant 1.000000e+00 : f32
    %15 = vector.broadcast %cst_15 : f32 to vector<16x128xf32>
    %16 = arith.addf %15, %14 : vector<16x128xf32>
    %17 = arith.divf %15, %16 : vector<16x128xf32>
    %c0_16 = arith.constant 0 : index
    %c0_17 = arith.constant 0 : index
    %18 = vector.load %arg9[%c0_16, %c0_17] : memref<16x128xf32, #tpu.memory_space<vmem>>, vector<16x128xf32>
    tpu.vector_store %arg9[%c0_16, %c0_17], %17 {strides = array<i32>} : memref<16x128xf32, #tpu.memory_space<vmem>>, vector<16x128xf32>,
    %c0_18 = arith.constant 0 : index
    %c0_19 = arith.constant 0 : index
    %19 = vector.load %arg5[%c0_18, %c0_19] : memref<24x24xf32, #tpu.memory_space<vmem>>, vector<24x24xf32>
    %c0_20 = arith.constant 0 : index
    %c0_21 = arith.constant 0 : index
    %20 = vector.load %arg2[%c0_20, %c0_21] : memref<24x32xf32, #tpu.memory_space<vmem>>, vector<24x32xf32>
    %c1 = arith.constant 1 : index
    %c0_22 = arith.constant 0 : index
    %c0_23 = arith.constant 0 : index
    %21 = vector.load %arg0[%c1, %c0_22, %c0_23] : memref<7x32x128xf32, #tpu.memory_space<vmem>>, vector<1x32x128xf32>
    %22 = vector.shape_cast %21 : vector<1x32x128xf32> to vector<32x128xf32>
    %cst_24 = arith.constant dense<0.000000e+00> : vector<24x128xf32>
    %23 = tpu.matmul %20, %22, %cst_24 {dimension_numbers = #tpu.dot_dimension_numbers<[1], [0], [0], [1], [0, 0, 1, 1], [], []>} : vector<24x32xf32>, vector<32x128xf32>, vector<24x128xf32> -> vector<24x128xf32>
    %cst_25 = arith.constant dense<0.000000e+00> : vector<24x128xf32>
    %24 = tpu.matmul %19, %23, %cst_25 {dimension_numbers = #tpu.dot_dimension_numbers<[1], [0], [0], [1], [0, 0, 1, 1], [], []>} : vector<24x24xf32>, vector<24x128xf32>, vector<24x128xf32> -> vector<24x128xf32>
    %c0_26 = arith.constant 0 : index
    %c0_27 = arith.constant 0 : index
    %25 = vector.load %arg8[%c0_26, %c0_27] : memref<24x8xf32, #tpu.memory_space<vmem>>, vector<24x8xf32>
    %c0_28 = arith.constant 0 : index
    %c0_29 = arith.constant 0 : index
    %26 = vector.load %arg3[%c0_28, %c0_29] : memref<8x32xf32, #tpu.memory_space<vmem>>, vector<8x32xf32>
    %c4 = arith.constant 4 : index
    %c0_30 = arith.constant 0 : index
    %c0_31 = arith.constant 0 : index
    %27 = vector.load %arg0[%c4, %c0_30, %c0_31] : memref<7x32x128xf32, #tpu.memory_space<vmem>>, vector<1x32x128xf32>
    %28 = vector.shape_cast %27 : vector<1x32x128xf32> to vector<32x128xf32>
    %cst_32 = arith.constant dense<0.000000e+00> : vector<8x128xf32>
    %29 = tpu.matmul %26, %28, %cst_32 {dimension_numbers = #tpu.dot_dimension_numbers<[1], [0], [0], [1], [0, 0, 1, 1], [], []>} : vector<8x32xf32>, vector<32x128xf32>, vector<8x128xf32> -> vector<8x128xf32>
    %cst_33 = arith.constant dense<0.000000e+00> : vector<24x128xf32>
    %30 = tpu.matmul %25, %29, %cst_33 {dimension_numbers = #tpu.dot_dimension_numbers<[1], [0], [0], [1], [0, 0, 1, 1], [], []>} : vector<24x8xf32>, vector<8x128xf32>, vector<24x128xf32> -> vector<24x128xf32>
    %31 = arith.addf %24, %30 : vector<24x128xf32>
    %c0_34 = arith.constant 0 : index
    %c0_35 = arith.constant 0 : index
    %32 = vector.load %arg7[%c0_34, %c0_35] : memref<16x24xf32, #tpu.memory_space<vmem>>, vector<16x24xf32>
    %c0_36 = arith.constant 0 : index
    %c0_37 = arith.constant 0 : index
    %33 = vector.load %arg1[%c0_36, %c0_37] : memref<16x32xf32, #tpu.memory_space<vmem>>, vector<16x32xf32>
    %c5 = arith.constant 5 : index
    %c0_38 = arith.constant 0 : index
    %c0_39 = arith.constant 0 : index
    %34 = vector.load %arg0[%c5, %c0_38, %c0_39] : memref<7x32x128xf32, #tpu.memory_space<vmem>>, vector<1x32x128xf32>
    %35 = vector.shape_cast %34 : vector<1x32x128xf32> to vector<32x128xf32>
    %cst_40 = arith.constant dense<0.000000e+00> : vector<16x128xf32>
    %36 = tpu.matmul %33, %35, %cst_40 {dimension_numbers = #tpu.dot_dimension_numbers<[1], [0], [0], [1], [0, 0, 1, 1], [], []>} : vector<16x32xf32>, vector<32x128xf32>, vector<16x128xf32> -> vector<16x128xf32>
    %cst_41 = arith.constant dense<0.000000e+00> : vector<24x128xf32>
    %37 = tpu.matmul %32, %36, %cst_41 {dimension_numbers = #tpu.dot_dimension_numbers<[0], [0], [1], [1], [0, 1, 1, 1], [], []>} : vector<16x24xf32>, vector<16x128xf32>, vector<24x128xf32> -> vector<24x128xf32>
    %38 = arith.addf %31, %37 : vector<24x128xf32>
    %39 = arith.negf %38 : vector<24x128xf32>
    %40 = math.exp %39 : vector<24x128xf32>
    %cst_42 = arith.constant 1.000000e+00 : f32
    %41 = vector.broadcast %cst_42 : f32 to vector<24x128xf32>
    %42 = arith.addf %41, %40 : vector<24x128xf32>
    %43 = arith.divf %41, %42 : vector<24x128xf32>
    %c0_43 = arith.constant 0 : index
    %c0_44 = arith.constant 0 : index
    %44 = vector.load %arg10[%c0_43, %c0_44] : memref<24x128xf32, #tpu.memory_space<vmem>>, vector<24x128xf32>
    tpu.vector_store %arg10[%c0_43, %c0_44], %43 {strides = array<i32>} : memref<24x128xf32, #tpu.memory_space<vmem>>, vector<24x128xf32>,
    %c0_45 = arith.constant 0 : index
    %c0_46 = arith.constant 0 : index
    %45 = vector.load %arg6[%c0_45, %c0_46] : memref<8x8xf32, #tpu.memory_space<vmem>>, vector<8x8xf32>
    %c0_47 = arith.constant 0 : index
    %c0_48 = arith.constant 0 : index
    %46 = vector.load %arg3[%c0_47, %c0_48] : memref<8x32xf32, #tpu.memory_space<vmem>>, vector<8x32xf32>
    %c2 = arith.constant 2 : index
    %c0_49 = arith.constant 0 : index
    %c0_50 = arith.constant 0 : index
    %47 = vector.load %arg0[%c2, %c0_49, %c0_50] : memref<7x32x128xf32, #tpu.memory_space<vmem>>, vector<1x32x128xf32>
    %48 = vector.shape_cast %47 : vector<1x32x128xf32> to vector<32x128xf32>
    %cst_51 = arith.constant dense<0.000000e+00> : vector<8x128xf32>
    %49 = tpu.matmul %46, %48, %cst_51 {dimension_numbers = #tpu.dot_dimension_numbers<[1], [0], [0], [1], [0, 0, 1, 1], [], []>} : vector<8x32xf32>, vector<32x128xf32>, vector<8x128xf32> -> vector<8x128xf32>
    %cst_52 = arith.constant dense<0.000000e+00> : vector<8x128xf32>
    %50 = tpu.matmul %45, %49, %cst_52 {dimension_numbers = #tpu.dot_dimension_numbers<[1], [0], [0], [1], [0, 0, 1, 1], [], []>} : vector<8x8xf32>, vector<8x128xf32>, vector<8x128xf32> -> vector<8x128xf32>
    %c0_53 = arith.constant 0 : index
    %c0_54 = arith.constant 0 : index
    %51 = vector.load %arg8[%c0_53, %c0_54] : memref<24x8xf32, #tpu.memory_space<vmem>>, vector<24x8xf32>
    %c0_55 = arith.constant 0 : index
    %c0_56 = arith.constant 0 : index
    %52 = vector.load %arg2[%c0_55, %c0_56] : memref<24x32xf32, #tpu.memory_space<vmem>>, vector<24x32xf32>
    %c6 = arith.constant 6 : index
    %c0_57 = arith.constant 0 : index
    %c0_58 = arith.constant 0 : index
    %53 = vector.load %arg0[%c6, %c0_57, %c0_58] : memref<7x32x128xf32, #tpu.memory_space<vmem>>, vector<1x32x128xf32>
    %54 = vector.shape_cast %53 : vector<1x32x128xf32> to vector<32x128xf32>
    %cst_59 = arith.constant dense<0.000000e+00> : vector<24x128xf32>
    %55 = tpu.matmul %52, %54, %cst_59 {dimension_numbers = #tpu.dot_dimension_numbers<[1], [0], [0], [1], [0, 0, 1, 1], [], []>} : vector<24x32xf32>, vector<32x128xf32>, vector<24x128xf32> -> vector<24x128xf32>
    %cst_60 = arith.constant dense<0.000000e+00> : vector<8x128xf32>
    %56 = tpu.matmul %51, %55, %cst_60 {dimension_numbers = #tpu.dot_dimension_numbers<[0], [0], [1], [1], [0, 1, 1, 1], [], []>} : vector<24x8xf32>, vector<24x128xf32>, vector<8x128xf32> -> vector<8x128xf32>
    %57 = arith.addf %50, %56 : vector<8x128xf32>
    %58 = arith.negf %57 : vector<8x128xf32>
    %59 = math.exp %58 : vector<8x128xf32>
    %cst_61 = arith.constant 1.000000e+00 : f32
    %60 = vector.broadcast %cst_61 : f32 to vector<8x128xf32>
    %61 = arith.addf %60, %59 : vector<8x128xf32>
    %62 = arith.divf %60, %61 : vector<8x128xf32>
    %c0_62 = arith.constant 0 : index
    %c0_63 = arith.constant 0 : index
    %63 = vector.load %arg11[%c0_62, %c0_63] : memref<8x128xf32, #tpu.memory_space<vmem>>, vector<8x128xf32>
    tpu.vector_store %arg11[%c0_62, %c0_63], %62 {strides = array<i32>} : memref<8x128xf32, #tpu.memory_space<vmem>>, vector<8x128xf32>,
    return
  }
}

</mosaic_0001>

<bundles_post_ra>
// kernel: tpu_custom_call.1
= control target key start
LH: loop header
LB: loop body
LE: loop exit
PB: predicated region body
PF: predicated region fallthrough
CT: control target
= control target key end

     0   :  { %17 = vsyncpa [#allocation3], 0  ;;  %s2445_s0 = inlined_call_operand.hbm [shape: f32[7,32,128], index: 0, kind: input, shape index: {}]   ;;  %s2446_s1 = inlined_call_operand.hbm [shape: f32[16,32], index: 1, kind: input, shape index: {}]   ;;  %s2447_s2 = inlined_call_operand.vmem [shape: f32[24,32], index: 2, kind: input, shape index: {}]   ;;  %s2448_s3 = inlined_call_operand.hbm [shape: f32[8,32], index: 3, kind: input, shape index: {}]   ;;  %s2449_s4 = inlined_call_operand.hbm [shape: f32[16,16], index: 4, kind: input, shape index: {}]   ;;  %s2450_s5 = inlined_call_operand.vmem [shape: f32[24,24], index: 5, kind: input, shape index: {}]   ;;  %s2451_s6 = inlined_call_operand.hbm [shape: f32[8,8], index: 6, kind: input, shape index: {}]   ;;  %s2452_s7 = inlined_call_operand.hbm [shape: f32[16,24], index: 7, kind: input, shape index: {}]   ;;  %s2453_s8 = inlined_call_operand.vmem [shape: f32[24,8], index: 8, kind: input, shape index: {}]   ;;  %s2454_s9 = inlined_call_operand.hbm [shape: f32[16,128], index: 9, kind: output, shape index: {0}]   ;;  %s2455_s10 = inlined_call_operand.hbm [shape: f32[24,128], index: 10, kind: output, shape index: {1}]   ;;  %s2456_s11 = inlined_call_operand.hbm [shape: f32[8,128], index: 11, kind: output, shape index: {2}]  }
   0x1   :  { %18 = vsyncpa [#allocation6], 0 }
   0x2   :  { %19 = vsyncpa [#allocation9], 0 }
   0x3   :  { %20 = vsyncpa [#allocation12], 0 }
   0x4   :  { %21 = vsyncpa [#allocation4], 0 }
   0x5   :  { %22 = vsyncpa [#allocation15], 0  ;;  %s2092_s17 = smov [#allocation5]   ;;  %s2093_s19 = smov [#allocation8]  }
   0x6   :  { %s40_s18 = sshll.u32 %s2092_s17, 4  ;;  %s64_s20 = sshll.u32 %s2093_s19, 4  ;;  %s41_s18 = int_to_ptr.vmem [resolvable:$true] %s40_s18  ;;  %s2166_s20 = int_to_ptr.vmem [resolvable:$true] %s64_s20 }
   0x7   :  { %s1882_s23 = scalar_lea.hbm %s2446_s1, 256 }
   0x8   :  { %p1883_p0 = scmp.ne.s32.totalorder %s2446_s1, %s1882_s23  ;;  %p1886_p1 = scmp.lt.u32.totalorder %s1882_s23, %s2446_s1 }
   0xa   :  { %p1888_p2 = pnand %p1886_p1, %p1883_p0 }
   0xc   :  { %1891 = shalt.err (!%p1888_p2)
}
   0xd   :  { %s1892_s28 = scalar_lea.vmem %s41_s18, 256  ;;  %p1897_p4 = scmp.lt.s32.totalorder %s41_s18, %s41_s18 }
   0xe   :  { %p1893_p3 = scmp.ne.s32.totalorder %s41_s18, %s1892_s28  ;;  %p1898_p5 = scmp.lt.s32.totalorder %s1892_s28, %s1892_s28 }
  0x10   :  { %p1899_p6 = por %p1898_p5, %p1897_p4 }
  0x12   :  { %p1900_p7 = pnand %p1899_p6, %p1893_p3 }
  0x14   :  { %1903 = shalt.err (!%p1900_p7)
}
  0x15   :  { %s2094_s29 = smov 128   ;;  %s2095_s30 = smov 8  }
  0x16   :  { %46 = dma.hbm_to_vmem [thread:$0]  %s2446_s1, 256, %s41_s18, [#allocation6], %s2094_s29, %s2094_s29, %s2095_s30  }
  0x17   :  { %s1904_s16 = scalar_lea.hbm %s2449_s4, 256 }
  0x18   :  { %p1905_p8 = scmp.ne.s32.totalorder %s2449_s4, %s1904_s16  ;;  %p1908_p9 = scmp.lt.u32.totalorder %s1904_s16, %s2449_s4 }
  0x1a   :  { %p1910_p10 = pnand %p1908_p9, %p1905_p8 }
  0x1c   :  { %1913 = shalt.err (!%p1910_p10)
}
  0x1d   :  { %s1914_s23 = scalar_lea.vmem %s2166_s20, 256  ;;  %p1919_p12 = scmp.lt.s32.totalorder %s2166_s20, %s2166_s20 }
  0x1e   :  { %p1915_p11 = scmp.ne.s32.totalorder %s2166_s20, %s1914_s23  ;;  %p1920_p13 = scmp.lt.s32.totalorder %s1914_s23, %s1914_s23 }
  0x20   :  { %p1921_p0 = por %p1920_p13, %p1919_p12 }
  0x22   :  { %p1922_p1 = pnand %p1921_p0, %p1915_p11 }
  0x24   :  { %1925 = shalt.err (!%p1922_p1)
}
  0x25   :  { %70 = dma.hbm_to_vmem [thread:$0]  %s2449_s4, 256, %s2166_s20, [#allocation9], %s2094_s29, %s2094_s29, %s2095_s30  }
  0x26   :  { %s2096_s24 = smov [#allocation2]   ;;  %s2097_s26 = smov [#allocation7]  }
  0x27   :  { %s28_s25 = sshll.u32 %s2096_s24, 4  ;;  %s55_s27 = sshll.u32 %s2097_s26, 4  ;;  %s29_s25 = int_to_ptr.vmem [resolvable:$true] %s28_s25  ;;  %s56_s27 = int_to_ptr.vmem [resolvable:$true] %s55_s27 }
  0x28   :  { %s1926_s13 = scalar_lea.hbm %s2445_s0, 3584 }
  0x29   :  { %p1927_p2 = scmp.ne.s32.totalorder %s2445_s0, %s1926_s13  ;;  %p1930_p3 = scmp.lt.u32.totalorder %s1926_s13, %s2445_s0 }
  0x2b   :  { %p1932_p4 = pnand %p1930_p3, %p1927_p2 }
  0x2d   :  { %1935 = shalt.err (!%p1932_p4)
}
  0x2e   :  { %s1936_s4 = scalar_lea.vmem %s29_s25, 3584  ;;  %p1941_p6 = scmp.lt.s32.totalorder %s29_s25, %s29_s25 }
  0x2f   :  { %p1937_p5 = scmp.ne.s32.totalorder %s29_s25, %s1936_s4  ;;  %p1942_p7 = scmp.lt.s32.totalorder %s1936_s4, %s1936_s4 }
  0x31   :  { %p1943_p8 = por %p1942_p7, %p1941_p6 }
  0x33   :  { %p1944_p9 = pnand %p1943_p8, %p1937_p5 }
  0x35   :  { %1947 = shalt.err (!%p1944_p9)
}
  0x36   :  { %34 = dma.hbm_to_vmem [thread:$0]  %s2445_s0, 3584, %s29_s25, [#allocation3], %s2094_s29, %s2094_s29, %s2095_s30  }
  0x37   :  { %s1948_s23 = scalar_lea.hbm %s2448_s3, 128 }
  0x38   :  { %p1949_p10 = scmp.ne.s32.totalorder %s2448_s3, %s1948_s23  ;;  %p1952_p11 = scmp.lt.u32.totalorder %s1948_s23, %s2448_s3 }
  0x3a   :  { %p1954_p12 = pnand %p1952_p11, %p1949_p10 }
  0x3c   :  { %1957 = shalt.err (!%p1954_p12)
}
  0x3d   :  { %s1958_s28 = scalar_lea.vmem %s56_s27, 128  ;;  %p1963_p0 = scmp.lt.s32.totalorder %s56_s27, %s56_s27 }
  0x3e   :  { %p1959_p13 = scmp.ne.s32.totalorder %s56_s27, %s1958_s28  ;;  %p1964_p1 = scmp.lt.s32.totalorder %s1958_s28, %s1958_s28 }
  0x40   :  { %p1965_p2 = por %p1964_p1, %p1963_p0 }
  0x42   :  { %p1966_p3 = pnand %p1965_p2, %p1959_p13 }
  0x44   :  { %1969 = shalt.err (!%p1966_p3)
}
  0x45   :  { %58 = dma.hbm_to_vmem [thread:$0]  %s2448_s3, 128, %s56_s27, [#allocation6]  }
  0x46   :  { %s2098_s12 = smov [#allocation10]   ;;  %s2099_s14 = smov [#allocation11]  }
  0x47   :  { %s79_s13 = sshll.u32 %s2098_s12, 4  ;;  %s88_s15 = sshll.u32 %s2099_s14, 4  ;;  %s80_s13 = int_to_ptr.vmem [resolvable:$true] %s79_s13  ;;  %s2230_s15 = int_to_ptr.vmem [resolvable:$true] %s88_s15 }
  0x48   :  { %s1970_s4 = scalar_lea.hbm %s2451_s6, 128 }
  0x49   :  { %p1971_p4 = scmp.ne.s32.totalorder %s2451_s6, %s1970_s4  ;;  %p1974_p5 = scmp.lt.u32.totalorder %s1970_s4, %s2451_s6 }
  0x4b   :  { %p1976_p6 = pnand %p1974_p5, %p1971_p4 }
  0x4d   :  { %1979 = shalt.err (!%p1976_p6)
}
  0x4e   :  { %s1980_s3 = scalar_lea.vmem %s80_s13, 128  ;;  %p1985_p8 = scmp.lt.s32.totalorder %s80_s13, %s80_s13 }
  0x4f   :  { %p1981_p7 = scmp.ne.s32.totalorder %s80_s13, %s1980_s3  ;;  %p1986_p9 = scmp.lt.s32.totalorder %s1980_s3, %s1980_s3 }
  0x51   :  { %p1987_p10 = por %p1986_p9, %p1985_p8 }
  0x53   :  { %p1988_p11 = pnand %p1987_p10, %p1981_p7 }
  0x55   :  { %1991 = shalt.err (!%p1988_p11)
}
  0x56   :  { %82 = dma.hbm_to_vmem [thread:$0]  %s2451_s6, 128, %s80_s13, [#allocation9]  }
  0x57   :  { %s1992_s24 = scalar_lea.hbm %s2452_s7, 256 }
  0x58   :  { %p1993_p12 = scmp.ne.s32.totalorder %s2452_s7, %s1992_s24  ;;  %p1996_p13 = scmp.lt.u32.totalorder %s1992_s24, %s2452_s7 }
  0x5a   :  { %p1998_p0 = pnand %p1996_p13, %p1993_p12 }
  0x5c   :  { %2001 = shalt.err (!%p1998_p0)
}
  0x5d   :  { %s2002_s12 = scalar_lea.vmem %s2230_s15, 256  ;;  %p2007_p2 = scmp.lt.s32.totalorder %s2230_s15, %s2230_s15 }
  0x5e   :  { %p2003_p1 = scmp.ne.s32.totalorder %s2230_s15, %s2002_s12  ;;  %p2008_p3 = scmp.lt.s32.totalorder %s2002_s12, %s2002_s12 }
  0x60   :  { %p2009_p4 = por %p2008_p3, %p2007_p2 }
  0x62   :  { %p2010_p5 = pnand %p2009_p4, %p2003_p1 }
  0x64   :  { %2013 = shalt.err (!%p2010_p5)
}
  0x65   :  { %94 = dma.hbm_to_vmem [thread:$0]  %s2452_s7, 256, %s2230_s15, [#allocation12], %s2094_s29, %s2094_s29, %s2095_s30  }
  0x66   :  { %2080 = dma.done.wait [#allocation3], 3584  }
  0x67   :  { %2081 = vsyncadd [#allocation3], 4294963712 }
  0x68   :  { %2082 = dma.done.wait [#allocation6], 384  }
  0x69   :  { %2083 = vsyncadd [#allocation6], 4294966912 }
  0x6a   :  { %2084 = dma.done.wait [#allocation9], 384  }
  0x6b   :  { %2085 = vsyncadd [#allocation9], 4294966912 }
  0x6c   :  { %2086 = dma.done.wait [#allocation12], 256  }
  0x6d   :  { %2087 = vsyncadd [#allocation12], 4294967040  ;;  %v2100_v0 = vmov 0.0|0.0   ;;  %vm2101_vm0 = vmmov 0   ;;  %v2102_v1 = vmov 0.0   ;;  %v211_v2 = vld [vmem:[#allocation2 + $0x60] sm:$0xff] }
  0x6e   :  { %1773 = vmatprep.subr.bf16.mxu1 %v2100_v0  ;;  %1620 = vmatprep.mubr.msk.f32.mxu1 %vm2101_vm0, %v2102_v1  ;;  %v212_v3 = vld [vmem:[#allocation2 + $0x68] sm:$0xff]  ;;  %v213_v4 = vld [vmem:[#allocation2 + $0x70] sm:$0xff]  ;;  %v214_v6 = vld [vmem:[#allocation2 + $0x78] sm:$0xff]  ;;  %vm123_vm1 = vcmask 261120   ;;  %vm304_vm2 = vcmask 195584   ;;  %vm386_vm3 = vcmask 130048  }
  0x6f   :  { %v1774_v5 = vpack.c.bf16 %v212_v3, %v211_v2  ;;  %v119_v7 = vld [vmem:[#allocation2] sm:$0xff]  ;;  %v120_v8 = vld [vmem:[#allocation2 + $0x8] sm:$0xff]  ;;  %v121_v9 = vld [vmem:[#allocation2 + $0x10] sm:$0xff]  ;;  %v1777_v10 = vpack.c.bf16 %v214_v6, %v213_v4  ;;  %vm664_vm4 = vcmask 64512  }
  0x70   :  { %v1765_v11 = vpack.c.bf16 %v120_v8, %v119_v7  ;;  %v122_v12 = vld [vmem:[#allocation2 + $0x18] sm:$0xff]  ;;  %v117_v13 = vld [vmem:[#allocation5] sm:$0xff]  ;;  %v490_v16 = vld [vmem:[#allocation2 + $0x28] sm:$0xff] }
  0x71   :  { %1775 = vmatpush3.bf16.msra.mxu1 %v1774_v5  ;;  %v1769_v14 = vpack.c.bf16 %v122_v12, %v121_v9  ;;  %1609 = vmatprep.mubr.msk.f32.mxu0 %vm123_vm1, %v117_v13  ;;  %v489_v15 = vld [vmem:[#allocation2 + $0x20] sm:$0xff]  ;;  %v491_v19 = vld [vmem:[#allocation2 + $0x30] sm:$0xff]  ;;  %v492_v20 = vld [vmem:[#allocation2 + $0x38] sm:$0xff] }
  0x72   :  { %1776 = vmatprep.subr.bf16.mxu1 %v2100_v0  ;;  %1766 = vmatprep.subr.bf16.mxu0 %v1765_v11  ;;  %v2272_v17 = vld [vmem:[%s2447_s2] sm:$0xff]  ;;  %v1788_v18 = vpack.c.bf16 %v490_v16, %v489_v15  ;;  %v849_v22 = vld [vmem:[#allocation2 + $0xa8] sm:$0xff]  ;;  %v1791_v25 = vpack.c.bf16 %v492_v20, %v491_v19  ;;  %v209_v27 = vld [vmem:[%s2447_s2 + $0x10] sm:$0xff] }
  0x73   :  { %1768 = vmatpush3.bf16.msra.mxu0 %v1765_v11  ;;  %v848_v21 = vld [vmem:[#allocation2 + $0xa0] sm:$0xff]  ;;  %v118_v23 = vld [vmem:[#allocation5 + $0x8] sm:$0xff]  ;;  %v850_v28 = vld [vmem:[#allocation2 + $0xb0] sm:$0xff] }
  0x74   :  { %1770 = vmatprep.subr.bf16.mxu0 %v1769_v14  ;;  %v208_v24 = vld [vmem:[%s2447_s2 + $0x8] sm:$0xff]  ;;  %v1802_v26 = vpack.c.bf16 %v849_v22, %v848_v21  ;;  %v851_v29 = vld [vmem:[#allocation2 + $0xb8] sm:$0xff]  ;;  %v1081_v31 = vld [vmem:[#allocation2 + $0x40] sm:$0xff] }
  0x75   :  { %1778 = vmatpush3.bf16.msra.mxu1 %v1777_v10  ;;  %v1806_v30 = vpack.c.bf16 %v851_v29, %v850_v28  ;;  %v1082_v32 = vld [vmem:[#allocation2 + $0x48] sm:$0xff]  ;;  %v1083_v34 = vld [vmem:[#allocation2 + $0x50] sm:$0xff]  ;;  %v1084_v35 = vld [vmem:[#allocation2 + $0x58] sm:$0xff] }
  0x76   :  { %1787 = vmatprep.subr.bf16.mxu1 %v2100_v0  ;;  %v1814_v33 = vpack.c.bf16 %v1082_v32, %v1081_v31  ;;  %v1817_v36 = vpack.c.bf16 %v1084_v35, %v1083_v34  ;;  %v205_v37 = vld [vmem:[#allocation11] sm:$0xff]  ;;  %v1165_v39 = vld [vmem:[#allocation2 + $0xc0] sm:$0xff]  ;;  %v1166_v40 = vld [vmem:[#allocation2 + $0xc8] sm:$0xff] }
  0x77   :  { %1772 = vmatpush3.bf16.msra.mxu0 %v1769_v14  ;;  %v2309_v38 = vld [vmem:[#allocation7] sm:$0xff]  ;;  %933 = vxpose.xlu0.b32.start [1/2] (short) (narrow) %v205_v37, 24  ;;  %v1820_v41 = vpack.c.bf16 %v1166_v40, %v1165_v39  ;;  %v1168_v43 = vld [vmem:[#allocation2 + $0xd8] sm:$0xff]  ;;  %v2327_v46 = vld [vmem:[%s2453_s8] sm:$0xff] }
  0x78   :  { %1621 = vmatmul.mubr.msk.f32.vlgmr.msra.gmra.mrb[0].mxu1 %vm123_vm1, %v2272_v17  ;;  %v1167_v42 = vld [vmem:[#allocation2 + $0xd0] sm:$0xff]  ;;  %v206_v44 = vld [vmem:[#allocation11 + $0x8] sm:$0xff]  ;;  %1258 = vxpose.xlu1.b32.start [1/3] (short) (narrow) %v2327_v46, 8  ;;  %v2334_v47 = vld [vmem:[%s2453_s8 + $0x8] sm:$0xff] }
  0x79   :  { %1623 = vmatprep.mubr.msk.f32.mxu1 %vm2101_vm0, %v2102_v1  ;;  %1789 = vmatpush3.bf16.msra.mxu1 %v1788_v18  ;;  %v1823_v45 = vpack.c.bf16 %v1168_v43, %v1167_v42  ;;  %v2342_v48 = vld [vmem:[%s2453_s8 + $0x10] sm:$0xff]  ;;  %v115_v59 = vld [vmem:[#allocation8] sm:$0xff]  ;;  %v587_v62 = vld [vmem:[#allocation2 + $0x80] sm:$0xff] }
  0x7a   :  { %1790 = vmatprep.subr.bf16.mxu1 %v2100_v0  ;;  %1610 = vmatmul.mubr.msk.f32.vlgmr.msra.gmra.mrb[0].mxu0 %vm123_vm1, %v118_v23  ;;  %v588_v63 = vld [vmem:[#allocation2 + $0x88] sm:$0xff]  ;;  %v116_v5 = vld [vmem:[#allocation8 + $0x8] sm:$0xff]  ;;  %v589_v7 = vld [vmem:[#allocation2 + $0x90] sm:$0xff] }
  0x7b   :  { %1635 = vmatprep.mubr.msk.f32.mxu0 %vm304_vm2, %v205_v37  ;;  %934 = vxpose.xlu0.b32.end [2/2] (short) (narrow) %v206_v44, 24  ;;  %v1794_v6 = vpack.c.bf16 %v588_v63, %v587_v62  ;;  %v590_v8 = vld [vmem:[#allocation2 + $0x98] sm:$0xff]  ;;  %v484_v39 = vld [vmem:[%s2450_s5 + $0x10] sm:$0xff] }
  0x7c   :  { %1624 = vmatmul.mubr.msk.f32.gmra.mrb[2].mxu1 %vm123_vm1, %v208_v24  ;;  %1259 = vxpose.xlu1.b32.cont [2/3] (short) (narrow) %v2334_v47, 8  ;;  %v1797_v11 = vpack.c.bf16 %v590_v8, %v589_v7 }
  0x7d   :  { %1626 = vmatprep.mubr.msk.f32.mxu1 %vm2101_vm0, %v2102_v1  ;;  %1792 = vmatpush3.bf16.msra.mxu1 %v1791_v25  ;;  %v1078_v25 = vld [vmem:[#allocation10] sm:$0xff] }
  0x7e   :  { %1803 = vmatprep.subr.bf16.mxu1 %v1802_v26 }
  0x80   :  { %1627 = vmatmul.mubr.msk.f32.gmra.mrb[4].mxu1 %vm123_vm1, %v209_v27  ;;  %1260 = vxpose.xlu1.b32.end [3/3] (short) (narrow) %v2342_v48, 8 }
  0x81   :  { %1653 = vmatprep.mubr.msk.f32.mxu1 %vm2101_vm0, %v2102_v1 }
  0x84   :  { %1654 = vmatmul.mubr.msk.f32.vlgmr.msra.gmra.mrb[6].mxu1 %vm123_vm1, %v2272_v17 }
  0x85   :  { %1656 = vmatprep.mubr.msk.f32.mxu1 %vm2101_vm0, %v2102_v1  ;;  %1805 = vmatpush3.bf16.msra.mxu1 %v1802_v26 }
  0x86   :  { %1807 = vmatprep.subr.bf16.mxu1 %v1806_v30 }
  0x88   :  { %1657 = vmatmul.mubr.msk.f32.gmra.mrb[8].mxu1 %vm123_vm1, %v208_v24 }
  0x89   :  { %1659 = vmatprep.mubr.msk.f32.mxu1 %vm2101_vm0, %v2102_v1  ;;  %1809 = vmatpush3.bf16.msra.mxu1 %v1806_v30 }
  0x8a   :  { %1813 = vmatprep.subr.bf16.mxu1 %v2100_v0 }
  0x8c   :  { %1660 = vmatmul.mubr.msk.f32.gmra.mrb[10].mxu1 %vm123_vm1, %v209_v27 }
  0x8d   :  { %1707 = vmatprep.mubr.msk.f32.mxu1 %vm123_vm1, %v117_v13 }
  0x90   :  { %1708 = vmatmul.mubr.msk.f32.vlgmr.msra.gmra.mrb[12].mxu1 %vm123_vm1, %v118_v23 }
  0x91   :  { %1815 = vmatpush3.bf16.msra.mxu1 %v1814_v33  ;;  %1731 = vmatprep.mubr.msk.f32.mxu1 %vm2101_vm0, %v2102_v1 }
  0x92   :  { %1816 = vmatprep.subr.bf16.mxu1 %v2100_v0 }
  0x95   :  { %1818 = vmatpush3.bf16.msra.mxu1 %v1817_v36  ;;  %v482_v36 = vld [vmem:[%s2450_s5] sm:$0xff] }
  0x96   :  { %1819 = vmatprep.subr.bf16.mxu1 %v2100_v0 }
  0x98   :  { %1732 = vmatmul.mubr.msk.f32.vlgmr.msra.gmra.mrb[14].mxu1 %vm123_vm1, %v2309_v38 }
  0x99   :  { %1821 = vmatpush3.bf16.msra.mxu1 %v1820_v41  ;;  %1742 = vmatprep.mubr.msk.f32.mxu1 %vm2101_vm0, %v2102_v1 }
  0x9a   :  { %1822 = vmatprep.subr.bf16.mxu1 %v2100_v0 }
  0x9d   :  { %1824 = vmatpush3.bf16.msra.mxu1 %v1823_v45 }
  0x9e   :  { %1825 = vmatprep.subr.bf16.mxu1 %v2100_v0 }
  0xa0   :  { %1743 = vmatmul.mubr.msk.f32.vlgmr.msra.gmra.mrb[16].mxu1 %vm123_vm1, %v2272_v17 }
  0xa1   :  { %1745 = vmatprep.mubr.msk.f32.mxu1 %vm2101_vm0, %v2102_v1 }
  0xa4   :  { %1746 = vmatmul.mubr.msk.f32.gmra.mrb[18].mxu1 %vm123_vm1, %v208_v24 }
  0xa5   :  { %1748 = vmatprep.mubr.msk.f32.mxu1 %vm2101_vm0, %v2102_v1 }
  0xa8   :  { %1749 = vmatmul.mubr.msk.f32.gmra.mrb[20].mxu1 %vm123_vm1, %v209_v27 }
  0xa9   :  { %1757 = vmatprep.mubr.msk.f32.mxu1 %vm2101_vm0, %v2102_v1 }
  0xf7   :  { %v949_v40 = vpop.trf.xlu0 }
  0xf8   :  { %v1274_v24 = vpop.trf.xlu1 }
  0xfb   :  { %v950_v41 = vpop.trf.xlu0 }
  0xff   :  { %v951_v42 = vpop.trf.xlu0 }
 0x14b   :  { %v290_v49 = vpop.f32.mrb[0].mxu1 }
 0x14c   :  { %v1622_v50 = vpop.f32.mrb[1].mxu1 }
 0x14d   :  { %v1611_v51 = vpop.f32.mrb[0].mxu0 }
 0x14e   :  { %v196_v53 = vpop.f32.mrb[1].mxu0 }
 0x14f   :  { %v295_v52 = vpop.f32.mrb[2].mxu1  ;;  %v1783_v56 = vpack.c.bf16 %v1611_v51, %v196_v53 }
 0x150   :  { %v1779_v54 = vpack.c.bf16 %v295_v52, %v290_v49  ;;  %v1625_v55 = vpop.f32.mrb[3].mxu1 }
 0x152   :  { %1780 = vmatprep.subr.bf16.mxu0 %v1779_v54 }
 0x153   :  { %1782 = vmatpush3.bf16.msra.mxu0 %v1779_v54  ;;  %v300_v57 = vpop.f32.mrb[4].mxu1 }
 0x154   :  { %v1628_v58 = vpop.f32.mrb[5].mxu1  ;;  %1633 = vmatprep.subr.mxu0 %v300_v57 }
 0x157   :  { %1634 = vmatpush3.msra.mxu0 %v300_v57  ;;  %v568_v60 = vpop.f32.mrb[6].mxu1 }
 0x158   :  { %1636 = vmatmul.mubr.msk.f32.vlgmr.msra.gmra.mrb[2].mxu0 %vm304_vm2, %v206_v44  ;;  %1784 = vmatprep.subr.bf16.mxu0 %v1783_v56  ;;  %v1655_v61 = vpop.f32.mrb[7].mxu1 }
 0x159   :  { %1786 = vmatpush3.bf16.msra.mxu0 %v1783_v56  ;;  %1642 = vmatprep.mubr.msk.f32.mxu0 %vm386_vm3, %v115_v59 }
 0x15a   :  { %1793 = vmatprep.subr.bf16.mxu0 %v2100_v0 }
 0x15b   :  { %v573_v2 = vpop.f32.mrb[8].mxu1 }
 0x15c   :  { %v1800_v3 = vpack.c.bf16 %v573_v2, %v568_v60  ;;  %v1658_v4 = vpop.f32.mrb[9].mxu1 }
 0x15f   :  { %v578_v9 = vpop.f32.mrb[10].mxu1 }
 0x160   :  { %1643 = vmatmul.mubr.msk.f32.vlgmr.msra.gmra.mrb[2].mxu0 %vm386_vm3, %v116_v5  ;;  %v1661_v10 = vpop.f32.mrb[11].mxu1 }
 0x161   :  { %1795 = vmatpush3.bf16.msra.mxu0 %v1794_v6  ;;  %1670 = vmatprep.mubr.msk.f32.mxu0 %vm2101_vm0, %v2102_v1 }
 0x162   :  { %1796 = vmatprep.subr.bf16.mxu0 %v2100_v0 }
 0x163   :  { %v1709_v12 = vpop.f32.mrb[12].mxu1 }
 0x164   :  { %v924_v13 = vpop.f32.mrb[13].mxu1 }
 0x165   :  { %1798 = vmatpush3.bf16.msra.mxu0 %v1797_v11  ;;  %v1811_v14 = vpack.c.bf16 %v1709_v12, %v924_v13 }
 0x166   :  { %1673 = vmatprep.subr.mxu0 %v2102_v1 }
 0x168   :  { %1671 = vmatmul.mubr.msk.f32.vlgmr.msra.gmra.mrb[4].mxu0 %vm123_vm1, %v2309_v38 }
 0x169   :  { %1675 = vmatprep.mubr.msk.f32.mxu0 %vm2101_vm0, %v2102_v1 }
 0x16b   :  { %v1154_v15 = vpop.f32.mrb[14].mxu1 }
 0x16c   :  { %v1733_v16 = vpop.f32.mrb[15].mxu1 }
 0x173   :  { %v1244_v17 = vpop.f32.mrb[16].mxu1 }
 0x174   :  { %v1744_v18 = vpop.f32.mrb[17].mxu1 }
 0x177   :  { %v1249_v19 = vpop.f32.mrb[18].mxu1 }
 0x178   :  { %v1826_v20 = vpack.c.bf16 %v1249_v19, %v1244_v17  ;;  %v1747_v21 = vpop.f32.mrb[19].mxu1 }
 0x17a   :  { %1827 = vmatpush3.bf16.msra.mxu1 %v1826_v20 }
 0x17b   :  { %1755 = vmatprep.subr.mxu1 %v2102_v1  ;;  %v1254_v22 = vpop.f32.mrb[20].mxu1 }
 0x17c   :  { %v1750_v23 = vpop.f32.mrb[21].mxu1 }
 0x17e   :  { %1756 = vmatpush3.msra.mxu1 %v1254_v22 }
 0x17f   :  { %1760 = vmatprep.subr.mxu1 %v2102_v1  ;;  %1758 = vmatmul.mubr.msk.f32.vlgmr.msra.gmra.mrb[22].mxu1 %vm304_vm2, %v1274_v24 }
 0x180   :  { %1761 = vmatpush3.msra.mxu1 %v1154_v15  ;;  %1762 = vmatprep.mubr.msk.f32.mxu1 %vm2101_vm0, %v2102_v1 }
 0x187   :  { %1763 = vmatmul.mubr.msk.f32.vlgmr.msra.gmra.mrb[22].mxu1 %vm664_vm4, %v1078_v25 }
 0x233   :  { %v1644_v26 = vpop.f32.mrb[2].mxu0 }
 0x234   :  { %v1502_v27 = vmul.f32 -1.442695, %v1644_v26  ;;  %v459_v28 = vpop.f32.mrb[3].mxu0 }
 0x235   :  { %v1501_v29 = vmul.f32 -1.442695, %v459_v28 }
 0x236   :  { %1858 = vpow2.f32 %v1502_v27 }
 0x237   :  { %1860 = vpow2.f32 %v1501_v29 }
 0x23b   :  { %v660_v30 = vpop.f32.mrb[4].mxu0 }
 0x23c   :  { %v1672_v31 = vpop.f32.mrb[5].mxu0  ;;  %1674 = vmatpush3.msra.mxu0 %v660_v30 }
 0x23d   :  { %1676 = vmatmul.mubr.msk.f32.vlgmr.msra.gmra.mrb[6].mxu0 %vm664_vm4, %v2327_v46  ;;  %1799 = vmatprep.subr.bf16.mxu0 %v2100_v0 }
 0x23e   :  { %1801 = vmatpush3.bf16.msra.mxu0 %v1800_v3  ;;  %1678 = vmatprep.mubr.msk.f32.mxu0 %vm2101_vm0, %v2102_v1 }
 0x23f   :  { %1688 = vmatprep.subr.mxu0 %v2102_v1 }
 0x240   :  { %v1859_v32 = vpop.eup %1858 }
 0x241   :  { %v1861_v33 = vpop.eup %1860  ;;  %v475_v34 = vadd.f32 1.0, %v1859_v32  ;;  %1679 = vmatmul.mubr.msk.f32.gmra.mrb[8].mxu0 %vm664_vm4, %v2334_v47 }
 0x242   :  { %v474_v35 = vadd.f32 1.0, %v1861_v33  ;;  %1689 = vmatpush3.msra.mxu0 %v578_v9  ;;  %1681 = vmatprep.mubr.msk.f32.mxu0 %vm2101_vm0, %v2102_v1 }
 0x243   :  { %1862 = vrcp.f32 %v475_v34  ;;  %1810 = vmatprep.subr.bf16.mxu0 %v2100_v0  ;;  %v483_v0 = vld [vmem:[%s2450_s5 + $0x8] sm:$0xff]  ;;  %s2103_s5 = smov [#allocation13]  }
 0x244   :  { %1864 = vrcp.f32 %v474_v35  ;;  %s1448_s26 = sshll.u32 %s2103_s5, 4  ;;  %s1449_s26 = int_to_ptr.vmem [resolvable:$true] %s1448_s26 }
 0x245   :  { %1682 = vmatmul.mubr.msk.f32.gmra.mrb[10].mxu0 %vm664_vm4, %v2342_v48  ;;  %s2014_s28 = scalar_lea.vmem %s1449_s26, 256  ;;  %p2019_p7 = scmp.lt.s32.totalorder %s1449_s26, %s1449_s26 }
 0x246   :  { %1690 = vmatprep.mubr.msk.f32.mxu0 %vm2101_vm0, %v2102_v1  ;;  %p2015_p6 = scmp.ne.s32.totalorder %s1449_s26, %s2014_s28  ;;  %p2020_p8 = scmp.lt.s32.totalorder %s2014_s28, %s2014_s28 }
 0x248   :  { %p2021_p9 = por %p2020_p8, %p2019_p7 }
 0x249   :  { %1691 = vmatmul.mubr.msk.f32.vlgmr.msra.gmra.mrb[6].mxu0 %vm304_vm2, %v482_v36 }
 0x24a   :  { %1812 = vmatpush3.bf16.msra.mxu0 %v1811_v14  ;;  %1693 = vmatprep.mubr.msk.f32.mxu0 %vm2101_vm0, %v2102_v1  ;;  %p2022_p10 = pnand %p2021_p9, %p2015_p6 }
 0x24d   :  { %v1863_v37 = vpop.eup %1862  ;;  %1694 = vmatmul.mubr.msk.f32.gmra.mrb[8].mxu0 %vm304_vm2, %v483_v0 }
 0x24e   :  { %v1865_v38 = vpop.eup %1864  ;;  %481 = vst [vmem:[#allocation13 + $0x8] sm:$0xff] %v1863_v37  ;;  %1696 = vmatprep.mubr.msk.f32.mxu0 %vm2101_vm0, %v2102_v1 }
 0x24f   :  { %480 = vst [vmem:[#allocation13] sm:$0xff] %v1865_v38 }
 0x251   :  { %1697 = vmatmul.mubr.msk.f32.gmra.mrb[10].mxu0 %vm304_vm2, %v484_v39 }
 0x252   :  { %1714 = vmatprep.mubr.msk.f32.mxu0 %vm2101_vm0, %v2102_v1 }
 0x255   :  { %1715 = vmatmul.mubr.msk.f32.vlgmr.msra.gmra.mrb[6].mxu0 %vm386_vm3, %v949_v40 }
 0x256   :  { %1717 = vmatprep.mubr.msk.f32.mxu0 %vm2101_vm0, %v2102_v1 }
 0x259   :  { %1718 = vmatmul.mubr.msk.f32.gmra.mrb[8].mxu0 %vm386_vm3, %v950_v41 }
 0x25a   :  { %1720 = vmatprep.mubr.msk.f32.mxu0 %vm2101_vm0, %v2102_v1  ;;  %v1432_v43 = vpop.f32.mrb[22].mxu1 }
 0x25b   :  { %v1764_v44 = vpop.f32.mrb[23].mxu1  ;;  %v1527_v45 = vmul.f32 -1.442695, %v1432_v43 }
 0x25d   :  { %1721 = vmatmul.mubr.msk.f32.gmra.mrb[10].mxu0 %vm386_vm3, %v951_v42  ;;  %1866 = vpow2.f32 %v1527_v45 }
 0x267   :  { %v1867_v46 = vpop.eup %1866 }
 0x268   :  { %v1439_v47 = vadd.f32 1.0, %v1867_v46 }
 0x26a   :  { %1868 = vrcp.f32 %v1439_v47 }
 0x274   :  { %v1869_v48 = vpop.eup %1868 }
 0x275   :  { %1442 = vst [vmem:[#allocation16] sm:$0xff] %v1869_v48 }
 0x276   :  { %2025 = shalt.err (!%p2022_p10)
}
 0x277   :  { %s2026_s12 = scalar_lea.hbm %s2454_s9, 256 }
 0x278   :  { %p2027_p11 = scmp.ne.s32.totalorder %s2454_s9, %s2026_s12  ;;  %p2030_p12 = scmp.lt.u32.totalorder %s2026_s12, %s2454_s9 }
 0x27a   :  { %p2032_p13 = pnand %p2030_p12, %p2027_p11 }
 0x27c   :  { %2035 = shalt.err (!%p2032_p13)
}
 0x27d   :  { %1454 = dma.vmem_to_hbm [thread:$0]  %s1449_s26, 256, %s2454_s9, [#allocation4], %s2094_s29, %s2094_s29, %s2095_s30  }
 0x27e   :  { %s2104_s9 = smov [#allocation14]   ;;  %s2105_s4 = smov [#allocation16]  }
 0x27f   :  { %s1460_s17 = sshll.u32 %s2104_s9, 4  ;;  %s1473_s2 = sshll.u32 %s2105_s4, 4  ;;  %s1461_s17 = int_to_ptr.vmem [resolvable:$true] %s1460_s17  ;;  %s1474_s2 = int_to_ptr.vmem [resolvable:$true] %s1473_s2 }
 0x280   :  { %s2036_s20 = scalar_lea.vmem %s1461_s17, 384  ;;  %p2041_p1 = scmp.lt.s32.totalorder %s1461_s17, %s1461_s17 }
 0x281   :  { %p2037_p0 = scmp.ne.s32.totalorder %s1461_s17, %s2036_s20  ;;  %p2042_p2 = scmp.lt.s32.totalorder %s2036_s20, %s2036_s20 }
 0x283   :  { %p2043_p3 = por %p2042_p2, %p2041_p1 }
 0x285   :  { %p2044_p4 = pnand %p2043_p3, %p2037_p0 }
 0x328   :  { %v1040_v1 = vpop.f32.mrb[6].mxu0 }
 0x329   :  { %v1518_v49 = vmul.f32 -1.442695, %v1040_v1  ;;  %v1716_v50 = vpop.f32.mrb[7].mxu0 }
 0x32b   :  { %1870 = vpow2.f32 %v1518_v49 }
 0x32c   :  { %v1045_v51 = vpop.f32.mrb[8].mxu0 }
 0x32d   :  { %v1519_v52 = vmul.f32 -1.442695, %v1045_v51  ;;  %v1719_v53 = vpop.f32.mrb[9].mxu0 }
 0x32f   :  { %1872 = vpow2.f32 %v1519_v52 }
 0x330   :  { %v1050_v54 = vpop.f32.mrb[10].mxu0 }
 0x331   :  { %v1520_v55 = vmul.f32 -1.442695, %v1050_v54  ;;  %v1722_v56 = vpop.f32.mrb[11].mxu0 }
 0x333   :  { %1874 = vpow2.f32 %v1520_v55 }
 0x335   :  { %v1871_v57 = vpop.eup %1870 }
 0x336   :  { %v1066_v58 = vadd.f32 1.0, %v1871_v57 }
 0x338   :  { %1876 = vrcp.f32 %v1066_v58 }
 0x339   :  { %v1873_v59 = vpop.eup %1872 }
 0x33a   :  { %v1067_v60 = vadd.f32 1.0, %v1873_v59 }
 0x33c   :  { %1878 = vrcp.f32 %v1067_v60 }
 0x33d   :  { %v1875_v61 = vpop.eup %1874 }
 0x33e   :  { %v1068_v62 = vadd.f32 1.0, %v1875_v61 }
 0x340   :  { %1880 = vrcp.f32 %v1068_v62 }
 0x342   :  { %v1877_v63 = vpop.eup %1876 }
 0x343   :  { %1075 = vst [vmem:[#allocation14] sm:$0xff] %v1877_v63 }
 0x346   :  { %v1879_v2 = vpop.eup %1878 }
 0x347   :  { %1076 = vst [vmem:[#allocation14 + $0x8] sm:$0xff] %v1879_v2 }
 0x34a   :  { %v1881_v3 = vpop.eup %1880 }
 0x34b   :  { %1077 = vst [vmem:[#allocation14 + $0x10] sm:$0xff] %v1881_v3 }
 0x34c   :  { %2047 = shalt.err (!%p2044_p4)
}
 0x34d   :  { %s2048_s22 = scalar_lea.hbm %s2455_s10, 384 }
 0x34e   :  { %p2049_p5 = scmp.ne.s32.totalorder %s2455_s10, %s2048_s22  ;;  %p2052_p6 = scmp.lt.u32.totalorder %s2048_s22, %s2455_s10 }
 0x350   :  { %p2054_p7 = pnand %p2052_p6, %p2049_p5 }
 0x352   :  { %2057 = shalt.err (!%p2054_p7)
}
 0x353   :  { %1466 = dma.vmem_to_hbm [thread:$0]  %s1461_s17, 384, %s2455_s10, [#allocation15], %s2094_s29, %s2094_s29, %s2095_s30  }
 0x354   :  { %s2058_s24 = scalar_lea.vmem %s1474_s2, 128  ;;  %p2063_p9 = scmp.lt.s32.totalorder %s1474_s2, %s1474_s2 }
 0x355   :  { %p2059_p8 = scmp.ne.s32.totalorder %s1474_s2, %s2058_s24  ;;  %p2064_p10 = scmp.lt.s32.totalorder %s2058_s24, %s2058_s24 }
 0x357   :  { %p2065_p11 = por %p2064_p10, %p2063_p9 }
 0x359   :  { %p2066_p12 = pnand %p2065_p11, %p2059_p8 }
 0x35b   :  { %2069 = shalt.err (!%p2066_p12)
}
 0x35c   :  { %s2070_s28 = scalar_lea.hbm %s2456_s11, 128 }
 0x35d   :  { %p2071_p13 = scmp.ne.s32.totalorder %s2456_s11, %s2070_s28  ;;  %p2074_p0 = scmp.lt.u32.totalorder %s2070_s28, %s2456_s11 }
 0x35f   :  { %p2076_p1 = pnand %p2074_p0, %p2071_p13 }
 0x361   :  { %2079 = shalt.err (!%p2076_p1)
}
 0x362   :  { %1476 = dma.vmem_to_hbm [thread:$0]  %s1474_s2, 128, %s2456_s11, [#allocation15]  }
 0x363   :  { %2088 = dma.done.wait [#allocation4], 256  }
 0x364   :  { %2089 = vsyncadd [#allocation4], 4294967040 }
 0x365   :  { %2090 = dma.done.wait [#allocation15], 512  }
 0x366   :  { %2091 = vsyncadd [#allocation15], 4294966784 }
 0x367   :  { %1486 = vsyncpa [#allocation3], 1 }
 0x368   :  { %1487 = vsyncpa [#allocation6], 1 }
 0x369   :  { %1488 = vsyncpa [#allocation9], 1 }
 0x36a   :  { %1489 = vsyncpa [#allocation12], 1 }
 0x36b   :  { %1490 = vsyncpa [#allocation4], 1 }
 0x36c   :  { %1491 = vsyncpa [#allocation15], 1 }

</bundles_post_ra>
